<compile_context>
chip_gen: v7x
topology: tpu7x:2x2x1
jax: 0.10.0
libtpu: 0.0.40
codegen_flags: <defaults>
</compile_context>

<pallas_src>
import functools

import jax
import jax.numpy as jnp
from jax import lax
from jax.experimental import pallas as pl
from jax.experimental.pallas import tpu as pltpu

H_SIZE = 16
IN_SIZE = 5
OUT_SIZE = 5


# -----------------------------------------------------------------------------
# Fused kernel: hoisted input projection + T-step recurrence + Linear + Sigmoid.
# -----------------------------------------------------------------------------
def _lstm_head_kernel(x_ref, w_ih_ref, w_hh_ref, b_ref, w_lin_ref, b_lin_ref,
                      y_ref, *, T, B):
    """
    x_ref     : (T*B, I)  time-major rows (row = t*B + b), unpadded
    w_ih_ref  : (I, 4H)   W_ih^T
    w_hh_ref  : (H, 4H)   W_hh^T
    b_ref     : (1, 4H)   b_ih + b_hh
    w_lin_ref : (H, OUT)  linear.weight^T
    b_lin_ref : (1, OUT)  linear.bias
    y_ref     : (B, OUT)  sigmoid(h_{T-1} @ W_lin^T + b_lin)
    """
    H = H_SIZE

    w_hh = w_hh_ref[...]                                   # (H, 4H), loop-invariant

    # Hoisted input projection + bias: one MXU pass over all T*B rows.
    # Independent of the recurrence -> entirely off the serial critical path.
    gx = (
        jnp.dot(x_ref[...], w_ih_ref[...], preferred_element_type=jnp.float32)
        + b_ref[...]
    )                                                      # (T*B, 4H)

    h = jnp.zeros((B, H), jnp.float32)
    c = jnp.zeros((B, H), jnp.float32)

    # Static unroll (T is small & static): h/c live in vregs, gate slices are
    # static, and the loop-invariant W_hh^T stays resident as the MXU RHS.
    for t in range(T):
        gates = gx[t * B:(t + 1) * B, :] + jnp.dot(
            h, w_hh, preferred_element_type=jnp.float32
        )                                                  # (B, 4H), order i,f,g,o
        s = jax.nn.sigmoid(gates)                          # one full-width EUP pass
        th = jnp.tanh(gates)                               # one full-width EUP pass
        i = s[:, 0 * H:1 * H]
        f = s[:, 1 * H:2 * H]
        g = th[:, 2 * H:3 * H]
        o = s[:, 3 * H:4 * H]
        c = f * c + i * g
        h = o * jnp.tanh(c)

    # Fused Linear(16,5) + Sigmoid head on the final hidden state only.
    y_ref[...] = jax.nn.sigmoid(
        jnp.dot(h, w_lin_ref[...], preferred_element_type=jnp.float32)
        + b_lin_ref[...]
    )


# -----------------------------------------------------------------------------
# Full forward: matches the PyTorch module's forward exactly.
# -----------------------------------------------------------------------------
def lstm_module_forward(x_bti, params):
    B, T, I = x_bti.shape
    # Single tiny host-side copy: time-major rows (row = t*B + b); the reshape
    # is a bitcast and fuses with the transpose under jit.
    x_tb = jnp.transpose(x_bti, (1, 0, 2)).reshape(T * B, I)
    kernel = functools.partial(_lstm_head_kernel, T=T, B=B)
    y = pl.pallas_call(
        kernel,
        out_shape=jax.ShapeDtypeStruct((B, OUT_SIZE), jnp.float32),
        in_specs=[pl.BlockSpec(memory_space=pltpu.MemorySpace.VMEM)] * 6,
        out_specs=pl.BlockSpec(memory_space=pltpu.MemorySpace.VMEM),
    )(x_tb, params["w_ih_t"], params["w_hh_t"], params["b_lstm"],
      params["w_lin_t"], params["b_lin"])
    # PyTorch: out.view(-1, H)[-1]  ==  row (b=B-1, t=T-1)  ==  last row of y.
    return y[-1]                                           # shape (5,)


# -----------------------------------------------------------------------------
# Pure-JAX reference (for correctness check).
# -----------------------------------------------------------------------------
def lstm_module_forward_ref(x_bti, params):
    H = H_SIZE
    w_ih_t, w_hh_t, b = params["w_ih_t"], params["w_hh_t"], params["b_lstm"]

    def step(carry, x_t):
        h, c = carry
        gates = x_t @ w_ih_t + h @ w_hh_t + b
        i = jax.nn.sigmoid(gates[:, 0 * H:1 * H])
        f = jax.nn.sigmoid(gates[:, 1 * H:2 * H])
        g = jnp.tanh(gates[:, 2 * H:3 * H])
        o = jax.nn.sigmoid(gates[:, 3 * H:4 * H])
        c = f * c + i * g
        h = o * jnp.tanh(c)
        return (h, c), h

    B = x_bti.shape[0]
    x_tbi = jnp.transpose(x_bti, (1, 0, 2))
    h0 = jnp.zeros((B, H), jnp.float32)
    c0 = jnp.zeros((B, H), jnp.float32)
    _, out_tbh = lax.scan(step, (h0, c0), x_tbi)
    flat = jnp.transpose(out_tbh, (1, 0, 2)).reshape(-1, H)
    y = jax.nn.sigmoid(flat @ params["w_lin_t"] + params["b_lin"])
    return y[-1]


# -----------------------------------------------------------------------------
# Deterministic parameter init (PyTorch default: U(-1/sqrt(H), 1/sqrt(H))).
# -----------------------------------------------------------------------------
def init_params(key):
    H, I = H_SIZE, IN_SIZE
    k = 1.0 / jnp.sqrt(jnp.float32(H))
    keys = jax.random.split(key, 6)
    u = lambda kk, shape: jax.random.uniform(kk, shape, jnp.float32, -k, k)
    w_ih = u(keys[0], (4 * H, I))      # weight_ih_l0
    w_hh = u(keys[1], (4 * H, H))      # weight_hh_l0
    b_ih = u(keys[2], (4 * H,))        # bias_ih_l0
    b_hh = u(keys[3], (4 * H,))        # bias_hh_l0
    w_lin = u(keys[4], (OUT_SIZE, H))  # linear.weight
    b_lin = u(keys[5], (OUT_SIZE,))    # linear.bias

    return {
        "w_ih_t": w_ih.T,                         # (I, 4H)
        "w_hh_t": w_hh.T,                         # (H, 4H)
        "b_lstm": (b_ih + b_hh)[None, :],         # (1, 4H)
        "w_lin_t": w_lin.T,                       # (H, 5)
        "b_lin": b_lin[None, :],                  # (1, 5)
    }


if __name__ == "__main__":
    key = jax.random.PRNGKey(0)
    kp, kx = jax.random.split(key)
    params = init_params(kp)

    B, T = 2, 8
    x = jax.random.normal(kx, (B, T, IN_SIZE), jnp.float32)

    forward = jax.jit(lstm_module_forward)
    out = jax.block_until_ready(forward(x, params))

    ref = jax.block_until_ready(lstm_module_forward_ref(x, params))
    assert out.shape == (5,)
    assert jnp.allclose(out, ref, atol=1e-5, rtol=1e-5), (out, ref)

    print("KERNEL_OK")
</pallas_src>

<mosaic_0001>
module attributes {stable_mosaic.version = 11 : i64} {
  func.func @_lstm_head_kernel(%arg0: memref<16x5xf32, #tpu.memory_space<vmem>>, %arg1: memref<5x64xf32, #tpu.memory_space<vmem>>, %arg2: memref<16x64xf32, #tpu.memory_space<vmem>>, %arg3: memref<1x64xf32, #tpu.memory_space<vmem>>, %arg4: memref<16x5xf32, #tpu.memory_space<vmem>>, %arg5: memref<1x5xf32, #tpu.memory_space<vmem>>, %arg6: memref<2x5xf32, #tpu.memory_space<vmem>>) attributes {dimension_semantics = [], scalar_prefetch = 0 : i64, scratch_operands = 0 : i64, tpu.core_type = #tpu.core_type<tc>} {
    %c0 = arith.constant 0 : index
    %c0_0 = arith.constant 0 : index
    %0 = vector.load %arg2[%c0, %c0_0] : memref<16x64xf32, #tpu.memory_space<vmem>>, vector<16x64xf32>
    %c0_1 = arith.constant 0 : index
    %c0_2 = arith.constant 0 : index
    %1 = vector.load %arg0[%c0_1, %c0_2] : memref<16x5xf32, #tpu.memory_space<vmem>>, vector<16x5xf32>
    %c0_3 = arith.constant 0 : index
    %c0_4 = arith.constant 0 : index
    %2 = vector.load %arg1[%c0_3, %c0_4] : memref<5x64xf32, #tpu.memory_space<vmem>>, vector<5x64xf32>
    %cst = arith.constant dense<0.000000e+00> : vector<16x64xf32>
    %3 = tpu.matmul %1, %2, %cst {dimension_numbers = #tpu.dot_dimension_numbers<[1], [0], [0], [1], [0, 0, 1, 1], [], []>} : vector<16x5xf32>, vector<5x64xf32>, vector<16x64xf32> -> vector<16x64xf32>
    %c0_5 = arith.constant 0 : index
    %c0_6 = arith.constant 0 : index
    %4 = vector.load %arg3[%c0_5, %c0_6] : memref<1x64xf32, #tpu.memory_space<vmem>>, vector<1x64xf32>
    %5 = vector.broadcast %4 : vector<1x64xf32> to vector<16x64xf32>
    %6 = arith.addf %3, %5 : vector<16x64xf32>
    %cst_7 = arith.constant 0.000000e+00 : f32
    %7 = vector.broadcast %cst_7 : f32 to vector<2x16xf32>
    %cst_8 = arith.constant 0.000000e+00 : f32
    %8 = vector.broadcast %cst_8 : f32 to vector<2x16xf32>
    %9 = vector.extract_strided_slice %6 {offsets = [0, 0], sizes = [2, 64], strides = [1, 1]} : vector<16x64xf32> to vector<2x64xf32>
    %cst_9 = arith.constant dense<0.000000e+00> : vector<2x64xf32>
    %10 = tpu.matmul %7, %0, %cst_9 {dimension_numbers = #tpu.dot_dimension_numbers<[1], [0], [0], [1], [0, 0, 1, 1], [], []>} : vector<2x16xf32>, vector<16x64xf32>, vector<2x64xf32> -> vector<2x64xf32>
    %11 = arith.addf %9, %10 : vector<2x64xf32>
    %12 = arith.negf %11 : vector<2x64xf32>
    %13 = math.exp %12 : vector<2x64xf32>
    %cst_10 = arith.constant 1.000000e+00 : f32
    %14 = vector.broadcast %cst_10 : f32 to vector<2x64xf32>
    %15 = arith.addf %14, %13 : vector<2x64xf32>
    %16 = arith.divf %14, %15 : vector<2x64xf32>
    %17 = math.tanh %11 : vector<2x64xf32>
    %18 = vector.extract_strided_slice %16 {offsets = [0, 0], sizes = [2, 16], strides = [1, 1]} : vector<2x64xf32> to vector<2x16xf32>
    %19 = vector.extract_strided_slice %16 {offsets = [0, 16], sizes = [2, 16], strides = [1, 1]} : vector<2x64xf32> to vector<2x16xf32>
    %20 = vector.extract_strided_slice %17 {offsets = [0, 32], sizes = [2, 16], strides = [1, 1]} : vector<2x64xf32> to vector<2x16xf32>
    %21 = vector.extract_strided_slice %16 {offsets = [0, 48], sizes = [2, 16], strides = [1, 1]} : vector<2x64xf32> to vector<2x16xf32>
    %22 = arith.mulf %19, %8 : vector<2x16xf32>
    %23 = arith.mulf %18, %20 : vector<2x16xf32>
    %24 = arith.addf %22, %23 : vector<2x16xf32>
    %25 = math.tanh %24 : vector<2x16xf32>
    %26 = arith.mulf %21, %25 : vector<2x16xf32>
    %27 = vector.extract_strided_slice %6 {offsets = [2, 0], sizes = [2, 64], strides = [1, 1]} : vector<16x64xf32> to vector<2x64xf32>
    %cst_11 = arith.constant dense<0.000000e+00> : vector<2x64xf32>
    %28 = tpu.matmul %26, %0, %cst_11 {dimension_numbers = #tpu.dot_dimension_numbers<[1], [0], [0], [1], [0, 0, 1, 1], [], []>} : vector<2x16xf32>, vector<16x64xf32>, vector<2x64xf32> -> vector<2x64xf32>
    %29 = arith.addf %27, %28 : vector<2x64xf32>
    %30 = arith.negf %29 : vector<2x64xf32>
    %31 = math.exp %30 : vector<2x64xf32>
    %cst_12 = arith.constant 1.000000e+00 : f32
    %32 = vector.broadcast %cst_12 : f32 to vector<2x64xf32>
    %33 = arith.addf %32, %31 : vector<2x64xf32>
    %34 = arith.divf %32, %33 : vector<2x64xf32>
    %35 = math.tanh %29 : vector<2x64xf32>
    %36 = vector.extract_strided_slice %34 {offsets = [0, 0], sizes = [2, 16], strides = [1, 1]} : vector<2x64xf32> to vector<2x16xf32>
    %37 = vector.extract_strided_slice %34 {offsets = [0, 16], sizes = [2, 16], strides = [1, 1]} : vector<2x64xf32> to vector<2x16xf32>
    %38 = vector.extract_strided_slice %35 {offsets = [0, 32], sizes = [2, 16], strides = [1, 1]} : vector<2x64xf32> to vector<2x16xf32>
    %39 = vector.extract_strided_slice %34 {offsets = [0, 48], sizes = [2, 16], strides = [1, 1]} : vector<2x64xf32> to vector<2x16xf32>
    %40 = arith.mulf %37, %24 : vector<2x16xf32>
    %41 = arith.mulf %36, %38 : vector<2x16xf32>
    %42 = arith.addf %40, %41 : vector<2x16xf32>
    %43 = math.tanh %42 : vector<2x16xf32>
    %44 = arith.mulf %39, %43 : vector<2x16xf32>
    %45 = vector.extract_strided_slice %6 {offsets = [4, 0], sizes = [2, 64], strides = [1, 1]} : vector<16x64xf32> to vector<2x64xf32>
    %cst_13 = arith.constant dense<0.000000e+00> : vector<2x64xf32>
    %46 = tpu.matmul %44, %0, %cst_13 {dimension_numbers = #tpu.dot_dimension_numbers<[1], [0], [0], [1], [0, 0, 1, 1], [], []>} : vector<2x16xf32>, vector<16x64xf32>, vector<2x64xf32> -> vector<2x64xf32>
    %47 = arith.addf %45, %46 : vector<2x64xf32>
    %48 = arith.negf %47 : vector<2x64xf32>
    %49 = math.exp %48 : vector<2x64xf32>
    %cst_14 = arith.constant 1.000000e+00 : f32
    %50 = vector.broadcast %cst_14 : f32 to vector<2x64xf32>
    %51 = arith.addf %50, %49 : vector<2x64xf32>
    %52 = arith.divf %50, %51 : vector<2x64xf32>
    %53 = math.tanh %47 : vector<2x64xf32>
    %54 = vector.extract_strided_slice %52 {offsets = [0, 0], sizes = [2, 16], strides = [1, 1]} : vector<2x64xf32> to vector<2x16xf32>
    %55 = vector.extract_strided_slice %52 {offsets = [0, 16], sizes = [2, 16], strides = [1, 1]} : vector<2x64xf32> to vector<2x16xf32>
    %56 = vector.extract_strided_slice %53 {offsets = [0, 32], sizes = [2, 16], strides = [1, 1]} : vector<2x64xf32> to vector<2x16xf32>
    %57 = vector.extract_strided_slice %52 {offsets = [0, 48], sizes = [2, 16], strides = [1, 1]} : vector<2x64xf32> to vector<2x16xf32>
    %58 = arith.mulf %55, %42 : vector<2x16xf32>
    %59 = arith.mulf %54, %56 : vector<2x16xf32>
    %60 = arith.addf %58, %59 : vector<2x16xf32>
    %61 = math.tanh %60 : vector<2x16xf32>
    %62 = arith.mulf %57, %61 : vector<2x16xf32>
    %63 = vector.extract_strided_slice %6 {offsets = [6, 0], sizes = [2, 64], strides = [1, 1]} : vector<16x64xf32> to vector<2x64xf32>
    %cst_15 = arith.constant dense<0.000000e+00> : vector<2x64xf32>
    %64 = tpu.matmul %62, %0, %cst_15 {dimension_numbers = #tpu.dot_dimension_numbers<[1], [0], [0], [1], [0, 0, 1, 1], [], []>} : vector<2x16xf32>, vector<16x64xf32>, vector<2x64xf32> -> vector<2x64xf32>
    %65 = arith.addf %63, %64 : vector<2x64xf32>
    %66 = arith.negf %65 : vector<2x64xf32>
    %67 = math.exp %66 : vector<2x64xf32>
    %cst_16 = arith.constant 1.000000e+00 : f32
    %68 = vector.broadcast %cst_16 : f32 to vector<2x64xf32>
    %69 = arith.addf %68, %67 : vector<2x64xf32>
    %70 = arith.divf %68, %69 : vector<2x64xf32>
    %71 = math.tanh %65 : vector<2x64xf32>
    %72 = vector.extract_strided_slice %70 {offsets = [0, 0], sizes = [2, 16], strides = [1, 1]} : vector<2x64xf32> to vector<2x16xf32>
    %73 = vector.extract_strided_slice %70 {offsets = [0, 16], sizes = [2, 16], strides = [1, 1]} : vector<2x64xf32> to vector<2x16xf32>
    %74 = vector.extract_strided_slice %71 {offsets = [0, 32], sizes = [2, 16], strides = [1, 1]} : vector<2x64xf32> to vector<2x16xf32>
    %75 = vector.extract_strided_slice %70 {offsets = [0, 48], sizes = [2, 16], strides = [1, 1]} : vector<2x64xf32> to vector<2x16xf32>
    %76 = arith.mulf %73, %60 : vector<2x16xf32>
    %77 = arith.mulf %72, %74 : vector<2x16xf32>
    %78 = arith.addf %76, %77 : vector<2x16xf32>
    %79 = math.tanh %78 : vector<2x16xf32>
    %80 = arith.mulf %75, %79 : vector<2x16xf32>
    %81 = vector.extract_strided_slice %6 {offsets = [8, 0], sizes = [2, 64], strides = [1, 1]} : vector<16x64xf32> to vector<2x64xf32>
    %cst_17 = arith.constant dense<0.000000e+00> : vector<2x64xf32>
    %82 = tpu.matmul %80, %0, %cst_17 {dimension_numbers = #tpu.dot_dimension_numbers<[1], [0], [0], [1], [0, 0, 1, 1], [], []>} : vector<2x16xf32>, vector<16x64xf32>, vector<2x64xf32> -> vector<2x64xf32>
    %83 = arith.addf %81, %82 : vector<2x64xf32>
    %84 = arith.negf %83 : vector<2x64xf32>
    %85 = math.exp %84 : vector<2x64xf32>
    %cst_18 = arith.constant 1.000000e+00 : f32
    %86 = vector.broadcast %cst_18 : f32 to vector<2x64xf32>
    %87 = arith.addf %86, %85 : vector<2x64xf32>
    %88 = arith.divf %86, %87 : vector<2x64xf32>
    %89 = math.tanh %83 : vector<2x64xf32>
    %90 = vector.extract_strided_slice %88 {offsets = [0, 0], sizes = [2, 16], strides = [1, 1]} : vector<2x64xf32> to vector<2x16xf32>
    %91 = vector.extract_strided_slice %88 {offsets = [0, 16], sizes = [2, 16], strides = [1, 1]} : vector<2x64xf32> to vector<2x16xf32>
    %92 = vector.extract_strided_slice %89 {offsets = [0, 32], sizes = [2, 16], strides = [1, 1]} : vector<2x64xf32> to vector<2x16xf32>
    %93 = vector.extract_strided_slice %88 {offsets = [0, 48], sizes = [2, 16], strides = [1, 1]} : vector<2x64xf32> to vector<2x16xf32>
    %94 = arith.mulf %91, %78 : vector<2x16xf32>
    %95 = arith.mulf %90, %92 : vector<2x16xf32>
    %96 = arith.addf %94, %95 : vector<2x16xf32>
    %97 = math.tanh %96 : vector<2x16xf32>
    %98 = arith.mulf %93, %97 : vector<2x16xf32>
    %99 = vector.extract_strided_slice %6 {offsets = [10, 0], sizes = [2, 64], strides = [1, 1]} : vector<16x64xf32> to vector<2x64xf32>
    %cst_19 = arith.constant dense<0.000000e+00> : vector<2x64xf32>
    %100 = tpu.matmul %98, %0, %cst_19 {dimension_numbers = #tpu.dot_dimension_numbers<[1], [0], [0], [1], [0, 0, 1, 1], [], []>} : vector<2x16xf32>, vector<16x64xf32>, vector<2x64xf32> -> vector<2x64xf32>
    %101 = arith.addf %99, %100 : vector<2x64xf32>
    %102 = arith.negf %101 : vector<2x64xf32>
    %103 = math.exp %102 : vector<2x64xf32>
    %cst_20 = arith.constant 1.000000e+00 : f32
    %104 = vector.broadcast %cst_20 : f32 to vector<2x64xf32>
    %105 = arith.addf %104, %103 : vector<2x64xf32>
    %106 = arith.divf %104, %105 : vector<2x64xf32>
    %107 = math.tanh %101 : vector<2x64xf32>
    %108 = vector.extract_strided_slice %106 {offsets = [0, 0], sizes = [2, 16], strides = [1, 1]} : vector<2x64xf32> to vector<2x16xf32>
    %109 = vector.extract_strided_slice %106 {offsets = [0, 16], sizes = [2, 16], strides = [1, 1]} : vector<2x64xf32> to vector<2x16xf32>
    %110 = vector.extract_strided_slice %107 {offsets = [0, 32], sizes = [2, 16], strides = [1, 1]} : vector<2x64xf32> to vector<2x16xf32>
    %111 = vector.extract_strided_slice %106 {offsets = [0, 48], sizes = [2, 16], strides = [1, 1]} : vector<2x64xf32> to vector<2x16xf32>
    %112 = arith.mulf %109, %96 : vector<2x16xf32>
    %113 = arith.mulf %108, %110 : vector<2x16xf32>
    %114 = arith.addf %112, %113 : vector<2x16xf32>
    %115 = math.tanh %114 : vector<2x16xf32>
    %116 = arith.mulf %111, %115 : vector<2x16xf32>
    %117 = vector.extract_strided_slice %6 {offsets = [12, 0], sizes = [2, 64], strides = [1, 1]} : vector<16x64xf32> to vector<2x64xf32>
    %cst_21 = arith.constant dense<0.000000e+00> : vector<2x64xf32>
    %118 = tpu.matmul %116, %0, %cst_21 {dimension_numbers = #tpu.dot_dimension_numbers<[1], [0], [0], [1], [0, 0, 1, 1], [], []>} : vector<2x16xf32>, vector<16x64xf32>, vector<2x64xf32> -> vector<2x64xf32>
    %119 = arith.addf %117, %118 : vector<2x64xf32>
    %120 = arith.negf %119 : vector<2x64xf32>
    %121 = math.exp %120 : vector<2x64xf32>
    %cst_22 = arith.constant 1.000000e+00 : f32
    %122 = vector.broadcast %cst_22 : f32 to vector<2x64xf32>
    %123 = arith.addf %122, %121 : vector<2x64xf32>
    %124 = arith.divf %122, %123 : vector<2x64xf32>
    %125 = math.tanh %119 : vector<2x64xf32>
    %126 = vector.extract_strided_slice %124 {offsets = [0, 0], sizes = [2, 16], strides = [1, 1]} : vector<2x64xf32> to vector<2x16xf32>
    %127 = vector.extract_strided_slice %124 {offsets = [0, 16], sizes = [2, 16], strides = [1, 1]} : vector<2x64xf32> to vector<2x16xf32>
    %128 = vector.extract_strided_slice %125 {offsets = [0, 32], sizes = [2, 16], strides = [1, 1]} : vector<2x64xf32> to vector<2x16xf32>
    %129 = vector.extract_strided_slice %124 {offsets = [0, 48], sizes = [2, 16], strides = [1, 1]} : vector<2x64xf32> to vector<2x16xf32>
    %130 = arith.mulf %127, %114 : vector<2x16xf32>
    %131 = arith.mulf %126, %128 : vector<2x16xf32>
    %132 = arith.addf %130, %131 : vector<2x16xf32>
    %133 = math.tanh %132 : vector<2x16xf32>
    %134 = arith.mulf %129, %133 : vector<2x16xf32>
    %135 = vector.extract_strided_slice %6 {offsets = [14, 0], sizes = [2, 64], strides = [1, 1]} : vector<16x64xf32> to vector<2x64xf32>
    %cst_23 = arith.constant dense<0.000000e+00> : vector<2x64xf32>
    %136 = tpu.matmul %134, %0, %cst_23 {dimension_numbers = #tpu.dot_dimension_numbers<[1], [0], [0], [1], [0, 0, 1, 1], [], []>} : vector<2x16xf32>, vector<16x64xf32>, vector<2x64xf32> -> vector<2x64xf32>
    %137 = arith.addf %135, %136 : vector<2x64xf32>
    %138 = arith.negf %137 : vector<2x64xf32>
    %139 = math.exp %138 : vector<2x64xf32>
    %cst_24 = arith.constant 1.000000e+00 : f32
    %140 = vector.broadcast %cst_24 : f32 to vector<2x64xf32>
    %141 = arith.addf %140, %139 : vector<2x64xf32>
    %142 = arith.divf %140, %141 : vector<2x64xf32>
    %143 = math.tanh %137 : vector<2x64xf32>
    %144 = vector.extract_strided_slice %142 {offsets = [0, 0], sizes = [2, 16], strides = [1, 1]} : vector<2x64xf32> to vector<2x16xf32>
    %145 = vector.extract_strided_slice %142 {offsets = [0, 16], sizes = [2, 16], strides = [1, 1]} : vector<2x64xf32> to vector<2x16xf32>
    %146 = vector.extract_strided_slice %143 {offsets = [0, 32], sizes = [2, 16], strides = [1, 1]} : vector<2x64xf32> to vector<2x16xf32>
    %147 = vector.extract_strided_slice %142 {offsets = [0, 48], sizes = [2, 16], strides = [1, 1]} : vector<2x64xf32> to vector<2x16xf32>
    %148 = arith.mulf %145, %132 : vector<2x16xf32>
    %149 = arith.mulf %144, %146 : vector<2x16xf32>
    %150 = arith.addf %148, %149 : vector<2x16xf32>
    %151 = math.tanh %150 : vector<2x16xf32>
    %152 = arith.mulf %147, %151 : vector<2x16xf32>
    %c0_25 = arith.constant 0 : index
    %c0_26 = arith.constant 0 : index
    %153 = vector.load %arg4[%c0_25, %c0_26] : memref<16x5xf32, #tpu.memory_space<vmem>>, vector<16x5xf32>
    %cst_27 = arith.constant dense<0.000000e+00> : vector<2x5xf32>
    %154 = tpu.matmul %152, %153, %cst_27 {dimension_numbers = #tpu.dot_dimension_numbers<[1], [0], [0], [1], [0, 0, 1, 1], [], []>} : vector<2x16xf32>, vector<16x5xf32>, vector<2x5xf32> -> vector<2x5xf32>
    %c0_28 = arith.constant 0 : index
    %c0_29 = arith.constant 0 : index
    %155 = vector.load %arg5[%c0_28, %c0_29] : memref<1x5xf32, #tpu.memory_space<vmem>>, vector<1x5xf32>
    %156 = vector.broadcast %155 : vector<1x5xf32> to vector<2x5xf32>
    %157 = arith.addf %154, %156 : vector<2x5xf32>
    %158 = arith.negf %157 : vector<2x5xf32>
    %159 = math.exp %158 : vector<2x5xf32>
    %cst_30 = arith.constant 1.000000e+00 : f32
    %160 = vector.broadcast %cst_30 : f32 to vector<2x5xf32>
    %161 = arith.addf %160, %159 : vector<2x5xf32>
    %162 = arith.divf %160, %161 : vector<2x5xf32>
    %c0_31 = arith.constant 0 : index
    %c0_32 = arith.constant 0 : index
    %163 = vector.load %arg6[%c0_31, %c0_32] : memref<2x5xf32, #tpu.memory_space<vmem>>, vector<2x5xf32>
    tpu.vector_store %arg6[%c0_31, %c0_32], %162 {strides = array<i32>} : memref<2x5xf32, #tpu.memory_space<vmem>>, vector<2x5xf32>,
    return
  }
}

</mosaic_0001>

<bundles_post_ra>
// kernel: lstm_module_forward.1
= control target key start
LH: loop header
LB: loop body
LE: loop exit
PB: predicated region body
PF: predicated region fallthrough
CT: control target
= control target key end

     0   :  { %vm42_vm0 = vcmask 1044480   ;;  %vm35_vm1 = vcmask 39936   ;;  %v1283_v3 = vmov 0.0|0.0   ;;  %vm1284_vm2 = vmmov 0   ;;  %s1286_s30 = smov 96   ;;  %s1288_s7 = smov 32   ;;  %s1447_s1 = inlined_call_operand.vmem [shape: f32[5,64], index: 1, kind: input, shape index: {}]   ;;  %s1448_s0 = inlined_call_operand.vmem [shape: f32[16,5], index: 0, kind: input, shape index: {}]   ;;  %s1449_s2 = inlined_call_operand.vmem [shape: f32[16,64], index: 2, kind: input, shape index: {}]   ;;  %s1450_s3 = inlined_call_operand.vmem [shape: f32[1,64], index: 3, kind: input, shape index: {}]   ;;  %s1451_s4 = inlined_call_operand.vmem [shape: f32[16,5], index: 4, kind: input, shape index: {}]   ;;  %s1452_s5 = inlined_call_operand.vmem [shape: f32[1,5], index: 5, kind: input, shape index: {}]   ;;  %s1453_s6 = inlined_call_operand.vmem [shape: f32[2,5], index: 6, kind: output, shape index: {}]  }
   0x1   :  { %v27_v0 = vld [vmem:[%s1447_s1] sm:$0x1f]  ;;  %v26_v2 = vld [vmem:[%s1448_s0 + $0x8] sm:$0xff]  ;;  %1181 = vmatprep.subr.bf16.mxu1 %v1283_v3  ;;  %v1285_v7 = vmov 0.0   ;;  %s1289_s8 = smov 80   ;;  %vm121_vm3 = vcmask 130048  }
   0x2   :  { %v25_v1 = vld [vmem:[%s1448_s0] sm:$0xff]  ;;  %1113 = vmatprep.subr.msk.mxu0 %vm42_vm0, %v27_v0  ;;  %v24_v5 = vld [vmem:[%s1449_s2 + $0x8] sm:$0xff]  ;;  %1122 = vmatprep.mubr.msk.f32.mxu1 %vm1284_vm2, %v1285_v7  ;;  %vm1055_vm4 = vcmask 33792  }
   0x3   :  { %1115 = vmatprep.mubr.msk.f32.mxu0 %vm35_vm1, %v25_v1  ;;  %v23_v4 = vld [vmem:[%s1449_s2] sm:$0xff]  ;;  %1114 = vmatpush3.msk.msra.mxu0 %vm42_vm0, %v27_v0 }
   0x4   :  { %v1342_v6 = vpack.c.bf16 %v24_v5, %v23_v4  ;;  %1116 = vmatmul.mubr.msk.f32.vlgmr.msra.gmra.mrb[0].mxu0 %vm35_vm1, %v26_v2  ;;  %1184 = vmatprep.subr.bf16.mxu0 %v1283_v3  ;;  %v1061_v8 = vld [vmem:[%s1450_s3] ss:$0 sm:$0xff]  ;;  %s1287_s3 = smov 16  }
   0x5   :  { %1129 = vmatprep.mubr.msk.f32.mxu0 %vm1284_vm2, %v1285_v7 }
   0x6   :  { %1183 = vmatpush3.bf16.msra.mxu1 %v1342_v6  ;;  %1186 = vmatpush3.bf16.msra.mxu0 %v1342_v6 }
   0x7   :  { %1187 = vmatprep.subr.bf16.mxu1 %v1283_v3  ;;  %1190 = vmatprep.subr.bf16.mxu0 %v1283_v3 }
   0x9   :  { %1123 = vmatmul.mubr.f32.vlgmr.msra.gmra.mrb[0].mxu1 %v1285_v7 }
   0xa   :  { %1189 = vmatpush3.bf16.msra.mxu1 %v1342_v6  ;;  %1136 = vmatprep.mubr.msk.f32.mxu1 %vm1284_vm2, %v1285_v7 }
   0xb   :  { %1193 = vmatprep.subr.bf16.mxu1 %v1283_v3 }
  0xd7   :  { %v1117_v9 = vpop.f32.mrb[0].mxu0 }
  0xd8   :  { %v1362_v10 = vadd.f32 %v1117_v9, %v1061_v8  ;;  %v112_v11 = vpop.f32.mrb[1].mxu0 }
  0xd9   :  { %v1364_v12 = vadd.f32 %v1061_v8, %v112_v11 }
  0xdc   :  { %v191_v13 = vpop.f32.mrb[0].mxu1 }
  0xdd   :  { %v195_v14 = vadd.f32 %v191_v13, %v1364_v12  ;;  %v1124_v15 = vpop.f32.mrb[1].mxu1 }
  0xdf   :  { %1215 = vtanh.f32 %v195_v14  ;;  %v1065_v17 = vmul.f32 -1.442695, %v195_v14 }
  0xe1   :  { %1217 = vpow2.f32 %v1065_v17 }
  0xe9   :  { %v1216_v16 = vpop.eup %1215 }
  0xea   :  { %205 = vrot.lane.b32.xlu0 %v1216_v16, %s1286_s30 }
  0xeb   :  { %v1218_v18 = vpop.eup %1217 }
  0xec   :  { %v199_v19 = vadd.f32 1.0, %v1218_v18 }
  0xee   :  { %1219 = vrcp.f32 %v199_v19 }
  0xf8   :  { %v1220_v20 = vpop.eup %1219 }
  0xf9   :  { %v203_v23 = vmul.f32 0.0, %v1220_v20 }
 0x15c   :  { %v206_v21 = vpop.permute.xlu0 %205 }
 0x15d   :  { %v208_v22 = vmul.f32 %v1220_v20, %v206_v21 }
 0x15f   :  { %210 = vrot.lane.b32.xlu0 %v208_v22, %s1287_s3 }
 0x1d1   :  { %v211_v24 = vpop.permute.xlu0 %210 }
 0x1d2   :  { %v213_v25 = vadd.f32 %v211_v24, %v203_v23 }
 0x1d4   :  { %1221 = vtanh.f32 %v213_v25  ;;  %v307_v41 = vrot.slane %v213_v25, 6 }
 0x1de   :  { %v1222_v26 = vpop.eup %1221 }
 0x1df   :  { %216 = vrot.lane.b32.xlu1 %v1222_v26, %s1288_s7 }
 0x251   :  { %v217_v27 = vpop.permute.xlu1 %216 }
 0x252   :  { %v219_v28 = vmul.f32 %v1220_v20, %v217_v27 }
 0x254   :  { %221 = vrot.lane.b32.xlu1 %v219_v28, %s1289_s8 }
 0x2c6   :  { %v222_v29 = vpop.permute.xlu1 %221 }
 0x2c7   :  { %1130 = vmatmul.mubr.msk.f32.vlgmr.msra.gmra.mrb[2].mxu0 %vm121_vm3, %v222_v29 }
 0x2c8   :  { %1192 = vmatpush3.bf16.msra.mxu0 %v1342_v6  ;;  %1143 = vmatprep.mubr.msk.f32.mxu0 %vm1284_vm2, %v1285_v7 }
 0x2c9   :  { %1196 = vmatprep.subr.bf16.mxu0 %v1283_v3 }
 0x39a   :  { %v291_v30 = vpop.f32.mrb[2].mxu0 }
 0x39b   :  { %v296_v31 = vrot.slane %v291_v30, 6  ;;  %v1131_v32 = vpop.f32.mrb[3].mxu0 }
 0x39d   :  { %v298_v33 = vadd.f32 %v296_v31, %v1364_v12 }
 0x39f   :  { %1223 = vtanh.f32 %v298_v33  ;;  %v1067_v35 = vmul.f32 -1.442695, %v298_v33 }
 0x3a1   :  { %1225 = vpow2.f32 %v1067_v35 }
 0x3a9   :  { %v1224_v34 = vpop.eup %1223 }
 0x3aa   :  { %311 = vrot.lane.b32.xlu0 %v1224_v34, %s1286_s30 }
 0x3ab   :  { %v1226_v36 = vpop.eup %1225 }
 0x3ac   :  { %v302_v37 = vadd.f32 1.0, %v1226_v36 }
 0x3ae   :  { %1227 = vrcp.f32 %v302_v37 }
 0x3b8   :  { %v1228_v38 = vpop.eup %1227 }
 0x3b9   :  { %v309_v42 = vmul.f32 %v1228_v38, %v307_v41 }
 0x41c   :  { %v312_v39 = vpop.permute.xlu0 %311 }
 0x41d   :  { %v314_v40 = vmul.f32 %v1228_v38, %v312_v39 }
 0x41f   :  { %316 = vrot.lane.b32.xlu1 %v314_v40, %s1287_s3 }
 0x491   :  { %v317_v43 = vpop.permute.xlu1 %316 }
 0x492   :  { %v319_v44 = vadd.f32 %v317_v43, %v309_v42 }
 0x494   :  { %1229 = vtanh.f32 %v319_v44  ;;  %v414_v61 = vrot.slane %v319_v44, 6 }
 0x49e   :  { %v1230_v45 = vpop.eup %1229 }
 0x49f   :  { %322 = vrot.lane.b32.xlu0 %v1230_v45, %s1288_s7 }
 0x511   :  { %v323_v46 = vpop.permute.xlu0 %322 }
 0x512   :  { %v325_v47 = vmul.f32 %v1228_v38, %v323_v46 }
 0x514   :  { %v327_v48 = vrot.slane %v325_v47, 2 }
 0x516   :  { %328 = vrot.lane.b32.xlu1 %v327_v48, %s1289_s8 }
 0x588   :  { %v329_v49 = vpop.permute.xlu1 %328 }
 0x589   :  { %1137 = vmatmul.mubr.msk.f32.vlgmr.msra.gmra.mrb[2].mxu1 %vm121_vm3, %v329_v49 }
 0x58a   :  { %1195 = vmatpush3.bf16.msra.mxu1 %v1342_v6  ;;  %1150 = vmatprep.mubr.msk.f32.mxu1 %vm1284_vm2, %v1285_v7 }
 0x58b   :  { %1199 = vmatprep.subr.bf16.mxu1 %v1283_v3 }
 0x65c   :  { %v398_v50 = vpop.f32.mrb[2].mxu1 }
 0x65d   :  { %v403_v51 = vrot.slane %v398_v50, 4  ;;  %v1138_v52 = vpop.f32.mrb[3].mxu1 }
 0x65f   :  { %v405_v53 = vadd.f32 %v403_v51, %v1364_v12 }
 0x661   :  { %1231 = vtanh.f32 %v405_v53  ;;  %v1069_v55 = vmul.f32 -1.442695, %v405_v53 }
 0x663   :  { %1233 = vpow2.f32 %v1069_v55 }
 0x66b   :  { %v1232_v54 = vpop.eup %1231 }
 0x66c   :  { %418 = vrot.lane.b32.xlu0 %v1232_v54, %s1286_s30 }
 0x66d   :  { %v1234_v56 = vpop.eup %1233 }
 0x66e   :  { %v409_v57 = vadd.f32 1.0, %v1234_v56 }
 0x670   :  { %1235 = vrcp.f32 %v409_v57 }
 0x67a   :  { %v1236_v58 = vpop.eup %1235 }
 0x67b   :  { %v416_v62 = vmul.f32 %v1236_v58, %v414_v61 }
 0x6de   :  { %v419_v59 = vpop.permute.xlu0 %418 }
 0x6df   :  { %v421_v60 = vmul.f32 %v1236_v58, %v419_v59 }
 0x6e1   :  { %423 = vrot.lane.b32.xlu1 %v421_v60, %s1287_s3 }
 0x753   :  { %v424_v63 = vpop.permute.xlu1 %423 }
 0x754   :  { %v426_v0 = vadd.f32 %v424_v63, %v416_v62 }
 0x756   :  { %1237 = vtanh.f32 %v426_v0  ;;  %v521_v22 = vrot.slane %v426_v0, 6 }
 0x760   :  { %v1238_v1 = vpop.eup %1237 }
 0x761   :  { %429 = vrot.lane.b32.xlu0 %v1238_v1, %s1288_s7 }
 0x7d3   :  { %v430_v2 = vpop.permute.xlu0 %429 }
 0x7d4   :  { %v432_v4 = vmul.f32 %v1236_v58, %v430_v2 }
 0x7d6   :  { %v434_v5 = vrot.slane %v432_v4, 4 }
 0x7d8   :  { %435 = vrot.lane.b32.xlu1 %v434_v5, %s1289_s8 }
 0x84a   :  { %v436_v8 = vpop.permute.xlu1 %435 }
 0x84b   :  { %1144 = vmatmul.mubr.msk.f32.vlgmr.msra.gmra.mrb[4].mxu0 %vm121_vm3, %v436_v8 }
 0x84c   :  { %1198 = vmatpush3.bf16.msra.mxu0 %v1342_v6  ;;  %1157 = vmatprep.mubr.msk.f32.mxu0 %vm1284_vm2, %v1285_v7 }
 0x84d   :  { %1202 = vmatprep.subr.bf16.mxu0 %v1283_v3 }
 0x91e   :  { %v505_v9 = vpop.f32.mrb[4].mxu0 }
 0x91f   :  { %v510_v11 = vrot.slane %v505_v9, 2  ;;  %v1145_v13 = vpop.f32.mrb[5].mxu0 }
 0x921   :  { %v512_v14 = vadd.f32 %v510_v11, %v1364_v12 }
 0x923   :  { %1239 = vtanh.f32 %v512_v14  ;;  %v1071_v16 = vmul.f32 -1.442695, %v512_v14 }
 0x925   :  { %1241 = vpow2.f32 %v1071_v16 }
 0x92d   :  { %v1240_v15 = vpop.eup %1239 }
 0x92e   :  { %525 = vrot.lane.b32.xlu0 %v1240_v15, %s1286_s30 }
 0x92f   :  { %v1242_v17 = vpop.eup %1241 }
 0x930   :  { %v516_v18 = vadd.f32 1.0, %v1242_v17 }
 0x932   :  { %1243 = vrcp.f32 %v516_v18 }
 0x93c   :  { %v1244_v19 = vpop.eup %1243 }
 0x93d   :  { %v523_v23 = vmul.f32 %v1244_v19, %v521_v22 }
 0x9a0   :  { %v526_v20 = vpop.permute.xlu0 %525 }
 0x9a1   :  { %v528_v21 = vmul.f32 %v1244_v19, %v526_v20 }
 0x9a3   :  { %530 = vrot.lane.b32.xlu1 %v528_v21, %s1287_s3 }
 0xa15   :  { %v531_v24 = vpop.permute.xlu1 %530 }
 0xa16   :  { %v533_v25 = vadd.f32 %v531_v24, %v523_v23 }
 0xa18   :  { %1245 = vtanh.f32 %v533_v25  ;;  %v625_v40 = vrot.slane %v533_v25, 6 }
 0xa22   :  { %v1246_v12 = vpop.eup %1245 }
 0xa23   :  { %536 = vrot.lane.b32.xlu0 %v1246_v12, %s1288_s7 }
 0xa95   :  { %v537_v26 = vpop.permute.xlu0 %536 }
 0xa96   :  { %v539_v27 = vmul.f32 %v1244_v19, %v537_v26 }
 0xa98   :  { %v541_v28 = vrot.slane %v539_v27, 6 }
 0xa9a   :  { %542 = vrot.lane.b32.xlu1 %v541_v28, %s1289_s8 }
 0xb0c   :  { %v543_v29 = vpop.permute.xlu1 %542 }
 0xb0d   :  { %1151 = vmatmul.mubr.msk.f32.vlgmr.msra.gmra.mrb[4].mxu1 %vm121_vm3, %v543_v29 }
 0xb0e   :  { %1201 = vmatpush3.bf16.msra.mxu1 %v1342_v6  ;;  %1164 = vmatprep.mubr.msk.f32.mxu1 %vm1284_vm2, %v1285_v7 }
 0xb0f   :  { %1205 = vmatprep.subr.bf16.mxu1 %v1283_v3 }
 0xbe0   :  { %v612_v30 = vpop.f32.mrb[4].mxu1 }
 0xbe1   :  { %v616_v31 = vadd.f32 %v612_v30, %v1362_v10  ;;  %v1152_v32 = vpop.f32.mrb[5].mxu1 }
 0xbe3   :  { %1247 = vtanh.f32 %v616_v31  ;;  %v1073_v34 = vmul.f32 -1.442695, %v616_v31 }
 0xbe5   :  { %1249 = vpow2.f32 %v1073_v34 }
 0xbed   :  { %v1248_v33 = vpop.eup %1247 }
 0xbee   :  { %629 = vrot.lane.b32.xlu0 %v1248_v33, %s1286_s30 }
 0xbef   :  { %v1250_v35 = vpop.eup %1249 }
 0xbf0   :  { %v620_v36 = vadd.f32 1.0, %v1250_v35 }
 0xbf2   :  { %1251 = vrcp.f32 %v620_v36 }
 0xbfc   :  { %v1252_v37 = vpop.eup %1251 }
 0xbfd   :  { %v627_v3 = vmul.f32 %v1252_v37, %v625_v40  ;;  %v965_v40 = vld [vmem:[%s1451_s4 + $0x8] sm:$0xff] }
 0xc60   :  { %v630_v38 = vpop.permute.xlu0 %629 }
 0xc61   :  { %v632_v39 = vmul.f32 %v1252_v37, %v630_v38 }
 0xc63   :  { %634 = vrot.lane.b32.xlu1 %v632_v39, %s1287_s3 }
 0xcd5   :  { %v635_v41 = vpop.permute.xlu1 %634 }
 0xcd6   :  { %v637_v42 = vadd.f32 %v635_v41, %v627_v3 }
 0xcd8   :  { %1253 = vtanh.f32 %v637_v42  ;;  %v731_v57 = vrot.slane %v637_v42, 6 }
 0xce2   :  { %v1254_v43 = vpop.eup %1253 }
 0xce3   :  { %640 = vrot.lane.b32.xlu0 %v1254_v43, %s1288_s7 }
 0xd55   :  { %v641_v44 = vpop.permute.xlu0 %640 }
 0xd56   :  { %v643_v45 = vmul.f32 %v1252_v37, %v641_v44 }
 0xd58   :  { %645 = vrot.lane.b32.xlu1 %v643_v45, %s1289_s8 }
 0xdca   :  { %v646_v46 = vpop.permute.xlu1 %645 }
 0xdcb   :  { %1158 = vmatmul.mubr.msk.f32.vlgmr.msra.gmra.mrb[6].mxu0 %vm121_vm3, %v646_v46  ;;  %v1080_v46 = vld [vmem:[%s1452_s5] ss:$0 sm:$0xff] }
 0xdcc   :  { %1204 = vmatpush3.bf16.msra.mxu0 %v1342_v6  ;;  %1171 = vmatprep.mubr.msk.f32.mxu0 %vm1284_vm2, %v1285_v7 }
 0xe9e   :  { %v715_v47 = vpop.f32.mrb[6].mxu0 }
 0xe9f   :  { %v720_v48 = vrot.slane %v715_v47, 6  ;;  %v1159_v49 = vpop.f32.mrb[7].mxu0 }
 0xea1   :  { %v722_v50 = vadd.f32 %v720_v48, %v1362_v10 }
 0xea3   :  { %1255 = vtanh.f32 %v722_v50  ;;  %v1075_v52 = vmul.f32 -1.442695, %v722_v50 }
 0xea5   :  { %1257 = vpow2.f32 %v1075_v52 }
 0xead   :  { %v1256_v51 = vpop.eup %1255 }
 0xeae   :  { %735 = vrot.lane.b32.xlu0 %v1256_v51, %s1286_s30 }
 0xeaf   :  { %v1258_v53 = vpop.eup %1257 }
 0xeb0   :  { %v726_v54 = vadd.f32 1.0, %v1258_v53 }
 0xeb2   :  { %1259 = vrcp.f32 %v726_v54 }
 0xebc   :  { %v1260_v55 = vpop.eup %1259 }
 0xebd   :  { %v733_v58 = vmul.f32 %v1260_v55, %v731_v57 }
 0xf20   :  { %v736_v56 = vpop.permute.xlu0 %735 }
 0xf21   :  { %v738_v6 = vmul.f32 %v1260_v55, %v736_v56 }
 0xf23   :  { %740 = vrot.lane.b32.xlu1 %v738_v6, %s1287_s3 }
 0xf95   :  { %v741_v59 = vpop.permute.xlu1 %740 }
 0xf96   :  { %v743_v60 = vadd.f32 %v741_v59, %v733_v58 }
 0xf98   :  { %1261 = vtanh.f32 %v743_v60 }
 0xfa2   :  { %v1262_v61 = vpop.eup %1261 }
 0xfa3   :  { %746 = vrot.lane.b32.xlu0 %v1262_v61, %s1288_s7 }
0x1015   :  { %v747_v62 = vpop.permute.xlu0 %746 }
0x1016   :  { %v749_v63 = vmul.f32 %v1260_v55, %v747_v62 }
0x1018   :  { %v751_v0 = vrot.slane %v749_v63, 2 }
0x101a   :  { %752 = vrot.lane.b32.xlu1 %v751_v0, %s1289_s8 }
0x108c   :  { %v753_v1 = vpop.permute.xlu1 %752 }
0x108d   :  { %1165 = vmatmul.mubr.msk.f32.vlgmr.msra.gmra.mrb[6].mxu1 %vm121_vm3, %v753_v1 }
0x108e   :  { %1178 = vmatprep.mubr.msk.f32.mxu1 %vm1284_vm2, %v1285_v7  ;;  %v838_v7 = vrot.slane %v743_v60, 6 }
0x1160   :  { %v822_v2 = vpop.f32.mrb[6].mxu1 }
0x1161   :  { %v827_v4 = vrot.slane %v822_v2, 4  ;;  %v1166_v5 = vpop.f32.mrb[7].mxu1 }
0x1163   :  { %v829_v8 = vadd.f32 %v827_v4, %v1362_v10 }
0x1165   :  { %1263 = vtanh.f32 %v829_v8  ;;  %v1077_v11 = vmul.f32 -1.442695, %v829_v8 }
0x1167   :  { %1265 = vpow2.f32 %v1077_v11 }
0x116f   :  { %v1264_v9 = vpop.eup %1263 }
0x1170   :  { %842 = vrot.lane.b32.xlu0 %v1264_v9, %s1286_s30 }
0x1171   :  { %v1266_v13 = vpop.eup %1265 }
0x1172   :  { %v833_v14 = vadd.f32 1.0, %v1266_v13 }
0x1174   :  { %1267 = vrcp.f32 %v833_v14 }
0x117e   :  { %v1268_v15 = vpop.eup %1267 }
0x117f   :  { %v840_v18 = vmul.f32 %v1268_v15, %v838_v7 }
0x11e2   :  { %v843_v16 = vpop.permute.xlu0 %842 }
0x11e3   :  { %v845_v17 = vmul.f32 %v1268_v15, %v843_v16 }
0x11e5   :  { %847 = vrot.lane.b32.xlu1 %v845_v17, %s1287_s3 }
0x1257   :  { %v848_v19 = vpop.permute.xlu1 %847 }
0x1258   :  { %v850_v20 = vadd.f32 %v848_v19, %v840_v18 }
0x125a   :  { %1269 = vtanh.f32 %v850_v20  ;;  %v945_v36 = vrot.slane %v850_v20, 6 }
0x1264   :  { %v1270_v21 = vpop.eup %1269 }
0x1265   :  { %853 = vrot.lane.b32.xlu0 %v1270_v21, %s1288_s7 }
0x12d7   :  { %v854_v22 = vpop.permute.xlu0 %853 }
0x12d8   :  { %v856_v23 = vmul.f32 %v1268_v15, %v854_v22 }
0x12da   :  { %v858_v24 = vrot.slane %v856_v23, 4 }
0x12dc   :  { %859 = vrot.lane.b32.xlu1 %v858_v24, %s1289_s8 }
0x134e   :  { %v860_v25 = vpop.permute.xlu1 %859 }
0x134f   :  { %1172 = vmatmul.mubr.msk.f32.vlgmr.msra.gmra.mrb[8].mxu0 %vm121_vm3, %v860_v25 }
0x1422   :  { %v929_v12 = vpop.f32.mrb[8].mxu0 }
0x1423   :  { %v934_v26 = vrot.slane %v929_v12, 2  ;;  %v1173_v27 = vpop.f32.mrb[9].mxu0 }
0x1425   :  { %v936_v28 = vadd.f32 %v934_v26, %v1362_v10  ;;  %v964_v10 = vld [vmem:[%s1451_s4] sm:$0xff] }
0x1426   :  { %v1206_v3 = vpack.c.bf16 %v965_v40, %v964_v10 }
0x1427   :  { %1271 = vtanh.f32 %v936_v28  ;;  %v1079_v30 = vmul.f32 -1.442695, %v936_v28 }
0x1428   :  { %1207 = vmatpush3.bf16.msra.mxu1 %v1206_v3 }
0x1429   :  { %1273 = vpow2.f32 %v1079_v30 }
0x1431   :  { %v1272_v29 = vpop.eup %1271 }
0x1432   :  { %949 = vrot.lane.b32.xlu0 %v1272_v29, %s1286_s30 }
0x1433   :  { %v1274_v31 = vpop.eup %1273 }
0x1434   :  { %v940_v32 = vadd.f32 1.0, %v1274_v31 }
0x1436   :  { %1275 = vrcp.f32 %v940_v32 }
0x1440   :  { %v1276_v33 = vpop.eup %1275 }
0x1441   :  { %v947_v37 = vmul.f32 %v1276_v33, %v945_v36 }
0x14a4   :  { %v950_v34 = vpop.permute.xlu0 %949 }
0x14a5   :  { %v952_v35 = vmul.f32 %v1276_v33, %v950_v34 }
0x14a7   :  { %954 = vrot.lane.b32.xlu1 %v952_v35, %s1287_s3 }
0x1519   :  { %v955_v38 = vpop.permute.xlu1 %954 }
0x151a   :  { %v957_v39 = vadd.f32 %v955_v38, %v947_v37 }
0x151c   :  { %1277 = vtanh.f32 %v957_v39 }
0x1526   :  { %v1278_v41 = vpop.eup %1277 }
0x1527   :  { %960 = vrot.lane.b32.xlu0 %v1278_v41, %s1288_s7 }
0x1599   :  { %v961_v42 = vpop.permute.xlu0 %960 }
0x159a   :  { %v963_v43 = vmul.f32 %v1276_v33, %v961_v42 }
0x159c   :  { %v974_v44 = vrot.slane %v963_v43, 6 }
0x159e   :  { %975 = vrot.lane.b32.xlu1 %v974_v44, %s1289_s8 }
0x1610   :  { %v976_v45 = vpop.permute.xlu1 %975 }
0x1611   :  { %1179 = vmatmul.mubr.msk.f32.vlgmr.msra.gmra.mrb[8].mxu1 %vm121_vm3, %v976_v45 }
0x16e4   :  { %v1045_v47 = vpop.f32.mrb[8].mxu1 }
0x16e5   :  { %v1046_v48 = vadd.f32 %v1080_v46, %v1045_v47  ;;  %v1180_v49 = vpop.f32.mrb[9].mxu1 }
0x16e7   :  { %v1082_v50 = vmul.f32 -1.442695, %v1046_v48 }
0x16e9   :  { %1279 = vpow2.f32 %v1082_v50 }
0x16f3   :  { %v1280_v51 = vpop.eup %1279 }
0x16f4   :  { %v1052_v52 = vadd.f32 1.0, %v1280_v51 }
0x16f6   :  { %1281 = vrcp.f32 %v1052_v52 }
0x1700   :  { %v1282_v53 = vpop.eup %1281 }
0x1701   :  { %1056 = vst.msk [vmem:[%s1453_s6] sm:$0x3] %vm1055_vm4, %v1282_v53 }

</bundles_post_ra>
